<compile_context>
chip_gen: v5e
topology: v5e:2x2
jax: 0.10.0
libtpu: 0.0.40
codegen_flags: <defaults>
</compile_context>

<pallas_src>
import jax
import jax.numpy as jnp
from jax.experimental import pallas as pl
from jax.experimental.pallas import tpu as pltpu

BN_EPS = 1e-5
F = 128  # padded feature width (lane tile)

# column-block order inside the packed weight buffer W [F, 7*F]
#   0: w1   (input  -> h1)
#   1: w2   (h1     -> h2)
#   2: wmu  (h2     -> latent)  \  adjacent -> fused [*, 2F] mu/logvar matmul
#   3: wlv  (h2     -> latent)  /
#   4: wd1  (latent -> h2)
#   5: wd2  (h2     -> h1)
#   6: wd3  (h1     -> input)
_W_ORDER = ("w1", "w2", "wmu", "wlv", "wd1", "wd2", "wd3")

# row order inside the packed vector buffer V [8, F]
#   0: g1  1: be1  2: g2  3: be2  4: bmu  5: blv  6: bd1  7: bd2
# (b1, b2, bd3, center_bias are cancelled by BN mean subtraction -> not packed)
_V_ORDER = ("g1", "be1", "g2", "be2", "bmu", "blv", "bd1", "bd2")


def _vae_kernel(x_ref, eps_ref, w_ref, v_ref, out_ref, mu_ref, lv_ref):
    k_in = x_ref.shape[1]      # true input_dim   (contraction rows of w1)
    k_lat = eps_ref.shape[1]   # true latent_dim  (contraction rows of wd1)
    inv_b = 1.0 / x_ref.shape[0]

    def vec(i):                # [1, 128] f32 bias / BN-affine row
        return v_ref[i:i + 1, :]

    def mm(a_bf16, rows, col, ncols):
        # bf16 MXU path, f32 accumulate; weight rows sliced to the true K
        return jnp.dot(a_bf16, w_ref[:rows, col:col + ncols],
                       preferred_element_type=jnp.float32)

    def bn_relu_bf16(h, gamma, beta):
        # training-mode BatchNorm1d, biased batch stats, single pass
        # (s, ss -> m, var), affine folded, ReLU fused, bf16 activation out.
        m = jnp.sum(h, axis=0, keepdims=True) * inv_b
        ss = jnp.sum(h * h, axis=0, keepdims=True) * inv_b
        var = jnp.maximum(ss - m * m, 0.0)
        scale = gamma * jax.lax.rsqrt(var + BN_EPS)
        return jnp.maximum(h * scale + (beta - m * scale),
                           0.0).astype(jnp.bfloat16)

    # ---------------- encoder ----------------
    # Linear biases b1/b2 are cancelled by the following BN mean subtraction.
    h = mm(x_ref[...].astype(jnp.bfloat16), k_in, 0 * F, F)
    h = bn_relu_bf16(h, vec(0), vec(1))
    h = mm(h, F, 1 * F, F)
    h = bn_relu_bf16(h, vec(2), vec(3))

    # ---------------- fused fc_mu / fc_logvar ----------------
    ml = mm(h, F, 2 * F, 2 * F)                      # [B, 256] single MXU push
    mu = ml[:, :F] + vec(4)
    lv = ml[:, F:] + vec(5)
    mu_l = mu[:, :k_lat]                             # true latent lanes only
    lv_l = lv[:, :k_lat]

    # ---------------- reparameterize ----------------
    z = (mu_l + jnp.exp(0.5 * lv_l) * eps_ref[...]).astype(jnp.bfloat16)

    # ---------------- decoder ----------------
    d = jnp.maximum(mm(z, k_lat, 4 * F, F) + vec(6), 0.0).astype(jnp.bfloat16)
    d = jnp.maximum(mm(d, F, 5 * F, F) + vec(7), 0.0).astype(jnp.bfloat16)
    # bd3 and center_bias are cancelled by the affine-free post_norm.
    d = mm(d, F, 6 * F, F)

    # post_norm: BatchNorm1d(affine=False), training mode, single-pass stats
    m = jnp.sum(d, axis=0, keepdims=True) * inv_b
    ss = jnp.sum(d * d, axis=0, keepdims=True) * inv_b
    var = jnp.maximum(ss - m * m, 0.0)
    d = (d - m) * jax.lax.rsqrt(var + BN_EPS)

    # true-width stores (no padded slab, no wrapper re-slice)
    out_ref[...] = d[:, :out_ref.shape[1]]
    mu_ref[...] = mu_l
    lv_ref[...] = lv_l


# ----------------------------------------------------------------------------
# parameters / packing
# ----------------------------------------------------------------------------
def init_params(key, input_dim, hidden_dims, latent_dim):
    """Deterministic synthetic parameters (shapes match the PyTorch module)."""
    params = {}

    def lin(k, d_in, d_out):
        kw, kb = jax.random.split(k)
        scale = 1.0 / jnp.sqrt(jnp.float32(d_in))
        w = jax.random.uniform(kw, (d_in, d_out), jnp.float32, -scale, scale)
        b = jax.random.uniform(kb, (1, d_out), jnp.float32, -scale, scale)
        return w, b

    keys = jax.random.split(key, 8)
    h1, h2 = hidden_dims

    params["w1"], params["b1"] = lin(keys[0], input_dim, h1)
    params["g1"] = jnp.ones((1, h1), jnp.float32)
    params["be1"] = jnp.zeros((1, h1), jnp.float32)

    params["w2"], params["b2"] = lin(keys[1], h1, h2)
    params["g2"] = jnp.ones((1, h2), jnp.float32)
    params["be2"] = jnp.zeros((1, h2), jnp.float32)

    params["wmu"], params["bmu"] = lin(keys[2], h2, latent_dim)
    params["wlv"], params["blv"] = lin(keys[3], h2, latent_dim)

    params["wd1"], params["bd1"] = lin(keys[4], latent_dim, h2)
    params["wd2"], params["bd2"] = lin(keys[5], h2, h1)
    params["wd3"], params["bd3"] = lin(keys[6], h1, input_dim)

    params["cb"] = jnp.zeros((1, input_dim), jnp.float32)  # center_bias
    return params


def pack_params(params):
    """Pad every feature dim to 128 and pack into two DMA-friendly buffers."""
    def pad_w(w):
        assert w.shape[0] <= F and w.shape[1] <= F, "dims >128 need wider packing"
        return jnp.zeros((F, F), jnp.float32).at[:w.shape[0], :w.shape[1]].set(w)

    def pad_v(v):
        v = jnp.asarray(v).reshape(1, -1)
        assert v.shape[1] <= F
        return jnp.zeros((1, F), jnp.float32).at[:, :v.shape[1]].set(v)

    w_packed = jnp.concatenate([pad_w(params[k]) for k in _W_ORDER],
                               axis=1).astype(jnp.bfloat16)        # [128, 896]
    v_packed = jnp.concatenate([pad_v(params[k]) for k in _V_ORDER],
                               axis=0)                             # [8, 128]
    return w_packed, v_packed


# ----------------------------------------------------------------------------
# wrappers
# ----------------------------------------------------------------------------
@jax.jit
def vae_forward(x, eps, w_packed, v_packed):
    B, input_dim = x.shape
    latent_dim = eps.shape[1]
    assert input_dim % 8 == 0 and latent_dim % 8 == 0, "pad dims to x8 host-side"

    vmem = pl.BlockSpec(memory_space=pltpu.MemorySpace.VMEM)
    out, mu, lv = pl.pallas_call(
        _vae_kernel,
        out_shape=(jax.ShapeDtypeStruct((B, input_dim), jnp.float32),
                   jax.ShapeDtypeStruct((B, latent_dim), jnp.float32),
                   jax.ShapeDtypeStruct((B, latent_dim), jnp.float32)),
        in_specs=[vmem, vmem, vmem, vmem],
        out_specs=(vmem, vmem, vmem),
    )(x, eps, w_packed, v_packed)
    return out, mu, lv


def vae_reference(params, x, eps):
    """Pure-f32 JAX reference of the PyTorch forward (with ALL biases)."""
    def bn(h, gamma, beta):
        m = h.mean(0, keepdims=True)
        v = ((h - m) ** 2).mean(0, keepdims=True)
        return gamma * (h - m) / jnp.sqrt(v + BN_EPS) + beta

    h = jax.nn.relu(bn(x @ params["w1"] + params["b1"], params["g1"], params["be1"]))
    h = jax.nn.relu(bn(h @ params["w2"] + params["b2"], params["g2"], params["be2"]))
    mu = h @ params["wmu"] + params["bmu"]
    lv = h @ params["wlv"] + params["blv"]
    z = mu + jnp.exp(0.5 * lv) * eps
    d = jax.nn.relu(z @ params["wd1"] + params["bd1"])
    d = jax.nn.relu(d @ params["wd2"] + params["bd2"])
    d = d @ params["wd3"] + params["bd3"] + params["cb"]
    m = d.mean(0, keepdims=True)
    v = ((d - m) ** 2).mean(0, keepdims=True)
    return (d - m) / jnp.sqrt(v + BN_EPS), mu, lv


if __name__ == "__main__":
    batch = 8
    input_dim = 32
    hidden_dims = (64, 32)
    latent_dim = 16

    key = jax.random.PRNGKey(0)
    k_params, k_x, k_eps = jax.random.split(key, 3)

    params = init_params(k_params, input_dim, hidden_dims, latent_dim)
    w_packed, v_packed = pack_params(params)

    x = jax.random.normal(k_x, (batch, input_dim), jnp.float32)
    eps = jax.random.normal(k_eps, (batch, latent_dim), jnp.float32)

    out, mu, lv = vae_forward(x, eps, w_packed, v_packed)
    jax.block_until_ready((out, mu, lv))

    assert out.shape == (batch, input_dim)
    assert mu.shape == (batch, latent_dim)
    assert lv.shape == (batch, latent_dim)
    assert bool(jnp.all(jnp.isfinite(out)))

    # loose tolerance: kernel uses bf16 MXU operands, reference is pure f32
    ro, rm, rl = vae_reference(params, x, eps)
    assert bool(jnp.allclose(out, ro, atol=0.2, rtol=0.2))
    assert bool(jnp.allclose(mu, rm, atol=0.2, rtol=0.2))
    assert bool(jnp.allclose(lv, rl, atol=0.2, rtol=0.2))

    print("KERNEL_OK")
</pallas_src>

<mosaic_0001>
module attributes {stable_mosaic.version = 11 : i64} {
  func.func @_vae_kernel(%arg0: memref<8x32xf32, #tpu.memory_space<vmem>>, %arg1: memref<8x16xf32, #tpu.memory_space<vmem>>, %arg2: memref<128x896xbf16, #tpu.memory_space<vmem>>, %arg3: memref<8x128xf32, #tpu.memory_space<vmem>>, %arg4: memref<8x32xf32, #tpu.memory_space<vmem>>, %arg5: memref<8x16xf32, #tpu.memory_space<vmem>>, %arg6: memref<8x16xf32, #tpu.memory_space<vmem>>) attributes {dimension_semantics = [], scalar_prefetch = 0 : i64, scratch_operands = 0 : i64, tpu.core_type = #tpu.core_type<tc>} {
    %c0 = arith.constant 0 : index
    %c0_0 = arith.constant 0 : index
    %0 = vector.load %arg0[%c0, %c0_0] : memref<8x32xf32, #tpu.memory_space<vmem>>, vector<8x32xf32>
    %1 = arith.truncf %0 : vector<8x32xf32> to vector<8x32xbf16>
    %c0_1 = arith.constant 0 : index
    %c0_2 = arith.constant 0 : index
    %2 = vector.load %arg2[%c0_1, %c0_2] : memref<128x896xbf16, #tpu.memory_space<vmem>>, vector<32x128xbf16>
    %cst = arith.constant dense<0.000000e+00> : vector<8x128xf32>
    %3 = tpu.matmul %1, %2, %cst {dimension_numbers = #tpu.dot_dimension_numbers<[1], [0], [0], [1], [0, 0, 1, 1], [], []>} : vector<8x32xbf16>, vector<32x128xbf16>, vector<8x128xf32> -> vector<8x128xf32>
    %c0_3 = arith.constant 0 : index
    %c0_4 = arith.constant 0 : index
    %4 = vector.load %arg3[%c0_3, %c0_4] : memref<8x128xf32, #tpu.memory_space<vmem>>, vector<1x128xf32>
    %c1 = arith.constant 1 : index
    %c0_5 = arith.constant 0 : index
    %5 = vector.load %arg3[%c1, %c0_5] : memref<8x128xf32, #tpu.memory_space<vmem>>, vector<1x128xf32>
    %cst_6 = arith.constant dense<0.000000e+00> : vector<128xf32>
    %6 = vector.multi_reduction <add>, %3, %cst_6 [0] : vector<8x128xf32> to vector<128xf32>
    %7 = vector.shape_cast %6 : vector<128xf32> to vector<1x128xf32>
    %cst_7 = arith.constant 1.250000e-01 : f32
    %8 = vector.broadcast %cst_7 : f32 to vector<1x128xf32>
    %9 = arith.mulf %7, %8 : vector<1x128xf32>
    %10 = arith.mulf %3, %3 : vector<8x128xf32>
    %cst_8 = arith.constant dense<0.000000e+00> : vector<128xf32>
    %11 = vector.multi_reduction <add>, %10, %cst_8 [0] : vector<8x128xf32> to vector<128xf32>
    %12 = vector.shape_cast %11 : vector<128xf32> to vector<1x128xf32>
    %cst_9 = arith.constant 1.250000e-01 : f32
    %13 = vector.broadcast %cst_9 : f32 to vector<1x128xf32>
    %14 = arith.mulf %12, %13 : vector<1x128xf32>
    %15 = arith.mulf %9, %9 : vector<1x128xf32>
    %16 = arith.subf %14, %15 : vector<1x128xf32>
    %cst_10 = arith.constant 0.000000e+00 : f32
    %17 = vector.broadcast %cst_10 : f32 to vector<1x128xf32>
    %18 = arith.maximumf %16, %17 : vector<1x128xf32>
    %cst_11 = arith.constant 9.99999974E-6 : f32
    %19 = vector.broadcast %cst_11 : f32 to vector<1x128xf32>
    %20 = arith.addf %18, %19 : vector<1x128xf32>
    %21 = math.rsqrt %20 : vector<1x128xf32>
    %22 = arith.mulf %4, %21 : vector<1x128xf32>
    %23 = vector.broadcast %22 : vector<1x128xf32> to vector<8x128xf32>
    %24 = arith.mulf %3, %23 : vector<8x128xf32>
    %25 = arith.mulf %9, %22 : vector<1x128xf32>
    %26 = arith.subf %5, %25 : vector<1x128xf32>
    %27 = vector.broadcast %26 : vector<1x128xf32> to vector<8x128xf32>
    %28 = arith.addf %24, %27 : vector<8x128xf32>
    %cst_12 = arith.constant 0.000000e+00 : f32
    %29 = vector.broadcast %cst_12 : f32 to vector<8x128xf32>
    %30 = arith.maximumf %28, %29 : vector<8x128xf32>
    %31 = arith.truncf %30 : vector<8x128xf32> to vector<8x128xbf16>
    %c0_13 = arith.constant 0 : index
    %c128 = arith.constant 128 : index
    %32 = vector.load %arg2[%c0_13, %c128] : memref<128x896xbf16, #tpu.memory_space<vmem>>, vector<128x128xbf16>
    %cst_14 = arith.constant dense<0.000000e+00> : vector<8x128xf32>
    %33 = tpu.matmul %31, %32, %cst_14 {dimension_numbers = #tpu.dot_dimension_numbers<[1], [0], [0], [1], [0, 0, 1, 1], [], []>} : vector<8x128xbf16>, vector<128x128xbf16>, vector<8x128xf32> -> vector<8x128xf32>
    %c2 = arith.constant 2 : index
    %c0_15 = arith.constant 0 : index
    %34 = vector.load %arg3[%c2, %c0_15] : memref<8x128xf32, #tpu.memory_space<vmem>>, vector<1x128xf32>
    %c3 = arith.constant 3 : index
    %c0_16 = arith.constant 0 : index
    %35 = vector.load %arg3[%c3, %c0_16] : memref<8x128xf32, #tpu.memory_space<vmem>>, vector<1x128xf32>
    %cst_17 = arith.constant dense<0.000000e+00> : vector<128xf32>
    %36 = vector.multi_reduction <add>, %33, %cst_17 [0] : vector<8x128xf32> to vector<128xf32>
    %37 = vector.shape_cast %36 : vector<128xf32> to vector<1x128xf32>
    %cst_18 = arith.constant 1.250000e-01 : f32
    %38 = vector.broadcast %cst_18 : f32 to vector<1x128xf32>
    %39 = arith.mulf %37, %38 : vector<1x128xf32>
    %40 = arith.mulf %33, %33 : vector<8x128xf32>
    %cst_19 = arith.constant dense<0.000000e+00> : vector<128xf32>
    %41 = vector.multi_reduction <add>, %40, %cst_19 [0] : vector<8x128xf32> to vector<128xf32>
    %42 = vector.shape_cast %41 : vector<128xf32> to vector<1x128xf32>
    %cst_20 = arith.constant 1.250000e-01 : f32
    %43 = vector.broadcast %cst_20 : f32 to vector<1x128xf32>
    %44 = arith.mulf %42, %43 : vector<1x128xf32>
    %45 = arith.mulf %39, %39 : vector<1x128xf32>
    %46 = arith.subf %44, %45 : vector<1x128xf32>
    %cst_21 = arith.constant 0.000000e+00 : f32
    %47 = vector.broadcast %cst_21 : f32 to vector<1x128xf32>
    %48 = arith.maximumf %46, %47 : vector<1x128xf32>
    %cst_22 = arith.constant 9.99999974E-6 : f32
    %49 = vector.broadcast %cst_22 : f32 to vector<1x128xf32>
    %50 = arith.addf %48, %49 : vector<1x128xf32>
    %51 = math.rsqrt %50 : vector<1x128xf32>
    %52 = arith.mulf %34, %51 : vector<1x128xf32>
    %53 = vector.broadcast %52 : vector<1x128xf32> to vector<8x128xf32>
    %54 = arith.mulf %33, %53 : vector<8x128xf32>
    %55 = arith.mulf %39, %52 : vector<1x128xf32>
    %56 = arith.subf %35, %55 : vector<1x128xf32>
    %57 = vector.broadcast %56 : vector<1x128xf32> to vector<8x128xf32>
    %58 = arith.addf %54, %57 : vector<8x128xf32>
    %cst_23 = arith.constant 0.000000e+00 : f32
    %59 = vector.broadcast %cst_23 : f32 to vector<8x128xf32>
    %60 = arith.maximumf %58, %59 : vector<8x128xf32>
    %61 = arith.truncf %60 : vector<8x128xf32> to vector<8x128xbf16>
    %c0_24 = arith.constant 0 : index
    %c256 = arith.constant 256 : index
    %62 = vector.load %arg2[%c0_24, %c256] : memref<128x896xbf16, #tpu.memory_space<vmem>>, vector<128x256xbf16>
    %cst_25 = arith.constant dense<0.000000e+00> : vector<8x256xf32>
    %63 = tpu.matmul %61, %62, %cst_25 {dimension_numbers = #tpu.dot_dimension_numbers<[1], [0], [0], [1], [0, 0, 1, 1], [], []>} : vector<8x128xbf16>, vector<128x256xbf16>, vector<8x256xf32> -> vector<8x256xf32>
    %64 = vector.extract_strided_slice %63 {offsets = [0, 0], sizes = [8, 128], strides = [1, 1]} : vector<8x256xf32> to vector<8x128xf32>
    %c4 = arith.constant 4 : index
    %c0_26 = arith.constant 0 : index
    %65 = vector.load %arg3[%c4, %c0_26] : memref<8x128xf32, #tpu.memory_space<vmem>>, vector<1x128xf32>
    %66 = vector.broadcast %65 : vector<1x128xf32> to vector<8x128xf32>
    %67 = arith.addf %64, %66 : vector<8x128xf32>
    %68 = vector.extract_strided_slice %63 {offsets = [0, 128], sizes = [8, 128], strides = [1, 1]} : vector<8x256xf32> to vector<8x128xf32>
    %c5 = arith.constant 5 : index
    %c0_27 = arith.constant 0 : index
    %69 = vector.load %arg3[%c5, %c0_27] : memref<8x128xf32, #tpu.memory_space<vmem>>, vector<1x128xf32>
    %70 = vector.broadcast %69 : vector<1x128xf32> to vector<8x128xf32>
    %71 = arith.addf %68, %70 : vector<8x128xf32>
    %72 = vector.extract_strided_slice %67 {offsets = [0, 0], sizes = [8, 16], strides = [1, 1]} : vector<8x128xf32> to vector<8x16xf32>
    %73 = vector.extract_strided_slice %71 {offsets = [0, 0], sizes = [8, 16], strides = [1, 1]} : vector<8x128xf32> to vector<8x16xf32>
    %cst_28 = arith.constant 5.000000e-01 : f32
    %74 = vector.broadcast %cst_28 : f32 to vector<8x16xf32>
    %75 = arith.mulf %74, %73 : vector<8x16xf32>
    %76 = math.exp %75 : vector<8x16xf32>
    %c0_29 = arith.constant 0 : index
    %c0_30 = arith.constant 0 : index
    %77 = vector.load %arg1[%c0_29, %c0_30] : memref<8x16xf32, #tpu.memory_space<vmem>>, vector<8x16xf32>
    %78 = arith.mulf %76, %77 : vector<8x16xf32>
    %79 = arith.addf %72, %78 : vector<8x16xf32>
    %80 = arith.truncf %79 : vector<8x16xf32> to vector<8x16xbf16>
    %c0_31 = arith.constant 0 : index
    %c512 = arith.constant 512 : index
    %81 = vector.load %arg2[%c0_31, %c512] : memref<128x896xbf16, #tpu.memory_space<vmem>>, vector<16x128xbf16>
    %cst_32 = arith.constant dense<0.000000e+00> : vector<8x128xf32>
    %82 = tpu.matmul %80, %81, %cst_32 {dimension_numbers = #tpu.dot_dimension_numbers<[1], [0], [0], [1], [0, 0, 1, 1], [], []>} : vector<8x16xbf16>, vector<16x128xbf16>, vector<8x128xf32> -> vector<8x128xf32>
    %c6 = arith.constant 6 : index
    %c0_33 = arith.constant 0 : index
    %83 = vector.load %arg3[%c6, %c0_33] : memref<8x128xf32, #tpu.memory_space<vmem>>, vector<1x128xf32>
    %84 = vector.broadcast %83 : vector<1x128xf32> to vector<8x128xf32>
    %85 = arith.addf %82, %84 : vector<8x128xf32>
    %cst_34 = arith.constant 0.000000e+00 : f32
    %86 = vector.broadcast %cst_34 : f32 to vector<8x128xf32>
    %87 = arith.maximumf %85, %86 : vector<8x128xf32>
    %88 = arith.truncf %87 : vector<8x128xf32> to vector<8x128xbf16>
    %c0_35 = arith.constant 0 : index
    %c640 = arith.constant 640 : index
    %89 = vector.load %arg2[%c0_35, %c640] : memref<128x896xbf16, #tpu.memory_space<vmem>>, vector<128x128xbf16>
    %cst_36 = arith.constant dense<0.000000e+00> : vector<8x128xf32>
    %90 = tpu.matmul %88, %89, %cst_36 {dimension_numbers = #tpu.dot_dimension_numbers<[1], [0], [0], [1], [0, 0, 1, 1], [], []>} : vector<8x128xbf16>, vector<128x128xbf16>, vector<8x128xf32> -> vector<8x128xf32>
    %c7 = arith.constant 7 : index
    %c0_37 = arith.constant 0 : index
    %91 = vector.load %arg3[%c7, %c0_37] : memref<8x128xf32, #tpu.memory_space<vmem>>, vector<1x128xf32>
    %92 = vector.broadcast %91 : vector<1x128xf32> to vector<8x128xf32>
    %93 = arith.addf %90, %92 : vector<8x128xf32>
    %cst_38 = arith.constant 0.000000e+00 : f32
    %94 = vector.broadcast %cst_38 : f32 to vector<8x128xf32>
    %95 = arith.maximumf %93, %94 : vector<8x128xf32>
    %96 = arith.truncf %95 : vector<8x128xf32> to vector<8x128xbf16>
    %c0_39 = arith.constant 0 : index
    %c768 = arith.constant 768 : index
    %97 = vector.load %arg2[%c0_39, %c768] : memref<128x896xbf16, #tpu.memory_space<vmem>>, vector<128x128xbf16>
    %cst_40 = arith.constant dense<0.000000e+00> : vector<8x128xf32>
    %98 = tpu.matmul %96, %97, %cst_40 {dimension_numbers = #tpu.dot_dimension_numbers<[1], [0], [0], [1], [0, 0, 1, 1], [], []>} : vector<8x128xbf16>, vector<128x128xbf16>, vector<8x128xf32> -> vector<8x128xf32>
    %cst_41 = arith.constant dense<0.000000e+00> : vector<128xf32>
    %99 = vector.multi_reduction <add>, %98, %cst_41 [0] : vector<8x128xf32> to vector<128xf32>
    %100 = vector.shape_cast %99 : vector<128xf32> to vector<1x128xf32>
    %cst_42 = arith.constant 1.250000e-01 : f32
    %101 = vector.broadcast %cst_42 : f32 to vector<1x128xf32>
    %102 = arith.mulf %100, %101 : vector<1x128xf32>
    %103 = arith.mulf %98, %98 : vector<8x128xf32>
    %cst_43 = arith.constant dense<0.000000e+00> : vector<128xf32>
    %104 = vector.multi_reduction <add>, %103, %cst_43 [0] : vector<8x128xf32> to vector<128xf32>
    %105 = vector.shape_cast %104 : vector<128xf32> to vector<1x128xf32>
    %cst_44 = arith.constant 1.250000e-01 : f32
    %106 = vector.broadcast %cst_44 : f32 to vector<1x128xf32>
    %107 = arith.mulf %105, %106 : vector<1x128xf32>
    %108 = arith.mulf %102, %102 : vector<1x128xf32>
    %109 = arith.subf %107, %108 : vector<1x128xf32>
    %cst_45 = arith.constant 0.000000e+00 : f32
    %110 = vector.broadcast %cst_45 : f32 to vector<1x128xf32>
    %111 = arith.maximumf %109, %110 : vector<1x128xf32>
    %112 = vector.broadcast %102 : vector<1x128xf32> to vector<8x128xf32>
    %113 = arith.subf %98, %112 : vector<8x128xf32>
    %cst_46 = arith.constant 9.99999974E-6 : f32
    %114 = vector.broadcast %cst_46 : f32 to vector<1x128xf32>
    %115 = arith.addf %111, %114 : vector<1x128xf32>
    %116 = math.rsqrt %115 : vector<1x128xf32>
    %117 = vector.broadcast %116 : vector<1x128xf32> to vector<8x128xf32>
    %118 = arith.mulf %113, %117 : vector<8x128xf32>
    %119 = vector.extract_strided_slice %118 {offsets = [0, 0], sizes = [8, 32], strides = [1, 1]} : vector<8x128xf32> to vector<8x32xf32>
    %c0_47 = arith.constant 0 : index
    %c0_48 = arith.constant 0 : index
    %120 = vector.load %arg4[%c0_47, %c0_48] : memref<8x32xf32, #tpu.memory_space<vmem>>, vector<8x32xf32>
    tpu.vector_store %arg4[%c0_47, %c0_48], %119 {strides = array<i32>} : memref<8x32xf32, #tpu.memory_space<vmem>>, vector<8x32xf32>,
    %c0_49 = arith.constant 0 : index
    %c0_50 = arith.constant 0 : index
    %121 = vector.load %arg5[%c0_49, %c0_50] : memref<8x16xf32, #tpu.memory_space<vmem>>, vector<8x16xf32>
    tpu.vector_store %arg5[%c0_49, %c0_50], %72 {strides = array<i32>} : memref<8x16xf32, #tpu.memory_space<vmem>>, vector<8x16xf32>,
    %c0_51 = arith.constant 0 : index
    %c0_52 = arith.constant 0 : index
    %122 = vector.load %arg6[%c0_51, %c0_52] : memref<8x16xf32, #tpu.memory_space<vmem>>, vector<8x16xf32>
    tpu.vector_store %arg6[%c0_51, %c0_52], %73 {strides = array<i32>} : memref<8x16xf32, #tpu.memory_space<vmem>>, vector<8x16xf32>,
    return
  }
}

</mosaic_0001>

<bundles_post_ra>
// kernel: vae_forward.1
= control target key start
LH: loop header
LB: loop body
LE: loop exit
PB: predicated region body
PF: predicated region fallthrough
CT: control target
= control target key end

     0   :  { %12 = vsyncpa [#allocation3], 0  ;;  %s1164_s0 = inlined_call_operand.hbm [shape: f32[8,32], index: 0, kind: input, shape index: {}]   ;;  %s1165_s1 = inlined_call_operand.hbm [shape: f32[8,16], index: 1, kind: input, shape index: {}]   ;;  %s1166_s2 = inlined_call_operand.hbm [shape: bf16[128,896], index: 2, kind: input, shape index: {}]   ;;  %s1167_s3 = inlined_call_operand.hbm [shape: f32[8,128], index: 3, kind: input, shape index: {}]   ;;  %s1168_s4 = inlined_call_operand.hbm [shape: f32[8,32], index: 4, kind: output, shape index: {0}]   ;;  %s1169_s5 = inlined_call_operand.hbm [shape: f32[8,16], index: 5, kind: output, shape index: {1}]   ;;  %s1170_s6 = inlined_call_operand.hbm [shape: f32[8,16], index: 6, kind: output, shape index: {2}]  }
   0x1   :  { %13 = vsyncpa [#allocation6], 0 }
   0x2   :  { %14 = vsyncpa [#allocation9], 0 }
   0x3   :  { %15 = vsyncpa [#allocation4], 0  ;;  %s33_s23 = sshll.u32 %s1165_s1, 4  ;;  %s34_s23 = int_to_ptr.hbm [resolvable:$true] %s33_s23 }
   0x4   :  { %16 = vsyncpa [#allocation12], 0  ;;  %s1094_s24 = smov [#allocation5]   ;;  %s22_s28 = sshll.u32 %s1164_s0, 4  ;;  %s23_s28 = int_to_ptr.hbm [resolvable:$true] %s22_s28 }
   0x5   :  { %s35_s25 = sshll.u32 %s1094_s24, 4  ;;  %s1095_s29 = smov [#allocation2]   ;;  %s36_s25 = int_to_ptr.vmem [resolvable:$true] %s35_s25 }
   0x6   :  { %38 = dma.hbm_to_vmem [thread:$0]  %s34_s23, 128, %s36_s25, [#allocation6]  }
   0x7   :  { %s24_s30 = sshll.u32 %s1095_s29, 4  ;;  %s43_s9 = sshll.u32 %s1166_s2, 4  ;;  %s25_s30 = int_to_ptr.vmem [resolvable:$true] %s24_s30  ;;  %s44_s9 = int_to_ptr.hbm [resolvable:$true] %s43_s9 }
   0x8   :  { %27 = dma.hbm_to_vmem [thread:$0]  %s23_s28, 128, %s25_s30, [#allocation3]  }
   0x9   :  { %s1096_s1 = smov [#allocation7]   ;;  %s57_s13 = sshll.u32 %s1167_s3, 4  ;;  %s58_s13 = int_to_ptr.hbm [resolvable:$true] %s57_s13 }
   0xa   :  { %s45_s10 = sshll.u32 %s1096_s1, 4  ;;  %s1097_s14 = smov 448   ;;  %s46_s10 = int_to_ptr.vmem [resolvable:$true] %s45_s10 }
   0xb   :  { %s1098_s0 = smov 28   ;;  %s1099_s15 = smov [#allocation8]  }
   0xc   :  { %51 = dma.hbm_to_vmem [thread:$0]  %s44_s9, 7168, %s46_s10, [#allocation6], %s1097_s14, %s1097_s14, %s1098_s0  }
   0xd   :  { %s59_s16 = sshll.u32 %s1099_s15, 4  ;;  %s60_s16 = int_to_ptr.vmem [resolvable:$true] %s59_s16 }
   0xe   :  { %62 = dma.hbm_to_vmem [thread:$0]  %s58_s13, 128, %s60_s16, [#allocation9]  }
   0xf   :  { %1084 = dma.done.wait [#allocation3], 128  }
  0x10   :  { %1085 = vsyncadd [#allocation3], 4294967168 }
  0x11   :  { %1086 = dma.done.wait [#allocation6], 7296  }
  0x12   :  { %1087 = vsyncadd [#allocation6], 4294960000 }
  0x13   :  { %1088 = dma.done.wait [#allocation9], 128  }
  0x14   :  { %1089 = vsyncadd [#allocation9], 4294967168  ;;  %v684_v0 = vld [vmem:[#allocation7 + $0x38] sm:$0xf]  ;;  %v853_v1 = vld [vmem:[#allocation7 + $0x50] sm:$0xf0] }
  0x15   :  { %v680_v2 = vld [vmem:[#allocation7] sm:$0xf]  ;;  %v685_v3 = vor.u32 %v853_v1, %v684_v0  ;;  %v852_v4 = vld [vmem:[#allocation7 + $0x18] sm:$0xf0]  ;;  %v80_v6 = vld [vmem:[#allocation2] sm:$0xff]  ;;  %vm98_vm0 = vcmask 261120  }
  0x16   :  { %v681_v5 = vor.u32 %v852_v4, %v680_v2  ;;  %v81_v7 = vpack.c.bf16 %v80_v6, %v80_v6  ;;  %v717_v8 = vld [vmem:[#allocation7 + $0x18c] sm:$0xf]  ;;  %v861_v9 = vld [vmem:[#allocation7 + $0x1a4] sm:$0xf0]  ;;  %v713_v10 = vld [vmem:[#allocation7 + $0x154] sm:$0xf] }
  0x17   :  { %108 = vmatpush.bf16.msra.mxu0 %v685_v3  ;;  %v718_v11 = vor.u32 %v861_v9, %v717_v8  ;;  %v860_v12 = vld [vmem:[#allocation7 + $0x16c] sm:$0xf0]  ;;  %v709_v14 = vld [vmem:[#allocation7 + $0x11c] sm:$0xf]  ;;  %v859_v15 = vld [vmem:[#allocation7 + $0x134] sm:$0xf0] }
  0x18   :  { %v714_v13 = vor.u32 %v860_v12, %v713_v10  ;;  %v710_v16 = vor.u32 %v859_v15, %v709_v14  ;;  %v705_v17 = vld [vmem:[#allocation7 + $0xe4] sm:$0xf]  ;;  %v858_v18 = vld [vmem:[#allocation7 + $0xfc] sm:$0xf0]  ;;  %v701_v20 = vld [vmem:[#allocation7 + $0xac] sm:$0xf] }
  0x19   :  { %219 = vmatpush.bf16.msra.mxu1 %v718_v11  ;;  %v706_v19 = vor.u32 %v858_v18, %v705_v17  ;;  %v857_v21 = vld [vmem:[#allocation7 + $0xc4] sm:$0xf0]  ;;  %v697_v23 = vld [vmem:[#allocation7 + $0x74] sm:$0xf]  ;;  %v856_v24 = vld [vmem:[#allocation7 + $0x8c] sm:$0xf0] }
  0x1a   :  { %v702_v22 = vor.u32 %v857_v21, %v701_v20  ;;  %v698_v28 = vor.u32 %v856_v24, %v697_v23  ;;  %v693_v31 = vld [vmem:[#allocation7 + $0x3c] sm:$0xf]  ;;  %v855_v32 = vld [vmem:[#allocation7 + $0x54] sm:$0xf0]  ;;  %v689_v38 = vld [vmem:[#allocation7 + $0x4] sm:$0xf] }
  0x1b   :  { %109 = vmatpush.bf16.msra.mxu0 %v681_v5  ;;  %v694_v35 = vor.u32 %v855_v32, %v693_v31  ;;  %v854_v39 = vld [vmem:[#allocation7 + $0x1c] sm:$0xf0]  ;;  %v877_v8 = vld [vmem:[#allocation7 + $0x1a8] sm:$0xf0]  ;;  %v876_v9 = vld [vmem:[#allocation7 + $0x194] sm:$0xf] }
  0x1c   :  { %v690_v43 = vor.u32 %v854_v39, %v689_v38  ;;  %v115_v58 = vld [vmem:[#allocation8] sm:$0x1]  ;;  %v116_v62 = vld [vmem:[#allocation8 + $0x1] sm:$0x1]  ;;  %v779_v11 = vld [vmem:[#allocation7 + $0x1ac] sm:$0xf0] }
  0x1d   :  { %220 = vmatpush.bf16.msra.mxu1 %v714_v13  ;;  %v769_v12 = vld [vmem:[#allocation7 + $0x158] sm:$0xf]  ;;  %v875_v13 = vld [vmem:[#allocation7 + $0x170] sm:$0xf0]  ;;  %v782_v14 = vor.u32 %v876_v9, %v779_v11  ;;  %v874_v15 = vld [vmem:[#allocation7 + $0x15c] sm:$0xf] }
  0x1e   :  { %686 = vmatmul.msk.bf16.vlgmr.msra.gmra.mxu0 %vm98_vm0, %v81_v7  ;;  %v777_v7 = vld [vmem:[#allocation7 + $0x190] sm:$0xf]  ;;  %v770_v17 = vor.u32 %v875_v13, %v769_v12  ;;  %v873_v20 = vld [vmem:[#allocation7 + $0x138] sm:$0xf0]  ;;  %v872_v21 = vld [vmem:[#allocation7 + $0x124] sm:$0xf] }
  0x1f   :  { %v778_v10 = vor.u32 %v877_v8, %v777_v7  ;;  %381 = vmatpush.bf16.msra.mxu3 %v782_v14  ;;  %v745_v31 = vld [vmem:[#allocation7 + $0xb0] sm:$0xf]  ;;  %v869_v32 = vld [vmem:[#allocation7 + $0xc8] sm:$0xf0]  ;;  %v867_v38 = vld [vmem:[#allocation7 + $0x90] sm:$0xf0] }
  0x20   :  { %vm417_vm7 = vcmask 130048   ;;  %s1100_s2 = smov [#allocation11]   ;;  %s646_s19 = sshll.u32 %s1169_s5, 4  ;;  %s647_s19 = int_to_ptr.hbm [resolvable:$true] %s646_s19 }
  0x21   :  { %221 = vmatpush.bf16.msra.mxu1 %v710_v16  ;;  %v771_v16 = vld [vmem:[#allocation7 + $0x174] sm:$0xf0]  ;;  %368 = vmatpush.bf16.msra.mxu2 %v778_v10  ;;  %s644_s3 = sshll.u32 %s1100_s2, 4  ;;  %s1101_s20 = smov [#allocation13]   ;;  %s645_s3 = int_to_ptr.vmem [resolvable:$true] %s644_s3 }
  0x22   :  { %v774_v18 = vor.u32 %v874_v15, %v771_v16  ;;  %s655_s21 = sshll.u32 %s1101_s20, 4  ;;  %s657_s24 = sshll.u32 %s1170_s6, 4  ;;  %s656_s21 = int_to_ptr.vmem [resolvable:$true] %s655_s21  ;;  %s658_s24 = int_to_ptr.hbm [resolvable:$true] %s657_s24 }
  0x23   :  { %s1102_s5 = smov [#allocation10]   ;;  %s635_s27 = sshll.u32 %s1168_s4, 4  ;;  %s636_s27 = int_to_ptr.hbm [resolvable:$true] %s635_s27 }
  0x24   :  { %382 = vmatpush.bf16.msra.mxu3 %v774_v18  ;;  %s633_s6 = sshll.u32 %s1102_s5, 4  ;;  %s634_s6 = int_to_ptr.vmem [resolvable:$true] %s633_s6 }
  0x25   :  { %222 = vmatpush.bf16.msra.mxu1 %v706_v19  ;;  %v761_v19 = vld [vmem:[#allocation7 + $0x120] sm:$0xf]  ;;  %369 = vmatpush.bf16.msra.mxu2 %v770_v17 }
  0x26   :  { %v762_v23 = vor.u32 %v873_v20, %v761_v19  ;;  %v232_v17 = vld [vmem:[#allocation8 + $0x2] sm:$0x1] }
  0x29   :  { %223 = vmatpush.bf16.msra.mxu1 %v702_v22  ;;  %v763_v22 = vld [vmem:[#allocation7 + $0x13c] sm:$0xf0]  ;;  %370 = vmatpush.bf16.msra.mxu2 %v762_v23 }
  0x2a   :  { %v766_v24 = vor.u32 %v872_v21, %v763_v22  ;;  %v233_v21 = vld [vmem:[#allocation8 + $0x3] sm:$0x1] }
  0x2c   :  { %383 = vmatpush.bf16.msra.mxu3 %v766_v24 }
  0x2d   :  { %224 = vmatpush.bf16.msra.mxu1 %v698_v28  ;;  %v755_v28 = vld [vmem:[#allocation7 + $0x104] sm:$0xf0] }
  0x31   :  { %225 = vmatpush.bf16.msra.mxu1 %v694_v35  ;;  %v746_v35 = vor.u32 %v869_v32, %v745_v31  ;;  %v878_v31 = vld [vmem:[#allocation7 + $0x28] sm:$0xf0] }
  0x35   :  { %226 = vmatpush.bf16.msra.mxu1 %v690_v43 }
  0x9b   :  { %v111_v25 = vpop.f32.mrf.mxu0 }
  0x9c   :  { %v117_v26 = vrot.slane %v111_v25, 4  ;;  %v124_v27 = vmul.f32 %v111_v25, %v111_v25 }
  0x9e   :  { %v118_v29 = vadd.f32 %v117_v26, %v111_v25  ;;  %v125_v30 = vrot.slane %v124_v27, 4  ;;  %v871_v26 = vld [vmem:[#allocation7 + $0x100] sm:$0xf0] }
  0xa0   :  { %v119_v33 = vrot.slane %v118_v29, 2  ;;  %v126_v34 = vadd.f32 %v125_v30, %v124_v27  ;;  %v870_v27 = vld [vmem:[#allocation7 + $0xec] sm:$0xf] }
  0xa1   :  { %v758_v30 = vor.u32 %v870_v27, %v755_v28 }
  0xa2   :  { %v120_v36 = vadd.f32 %v119_v33, %v118_v29  ;;  %v127_v37 = vrot.slane %v126_v34, 2  ;;  %v868_v33 = vld [vmem:[#allocation7 + $0xb4] sm:$0xf] }
  0xa3   :  { %v113_v40 = vpop.f32.mrf.mxu0  ;;  %384 = vmatpush.bf16.msra.mxu3 %v758_v30  ;;  %v785_v30 = vld [vmem:[#allocation7 + $0x10] sm:$0xf] }
  0xa4   :  { %v121_v41 = vrot.slane %v120_v36, 1  ;;  %v128_v42 = vadd.f32 %v127_v37, %v126_v34  ;;  %v747_v34 = vld [vmem:[#allocation7 + $0xcc] sm:$0xf0]  ;;  %v737_v37 = vld [vmem:[#allocation7 + $0x78] sm:$0xf]  ;;  %v786_v32 = vor.u32 %v878_v31, %v785_v30 }
  0xa5   :  { %v866_v40 = vld [vmem:[#allocation7 + $0x7c] sm:$0xf] }
  0xa6   :  { %v129_v44 = vrot.slane %v128_v42, 1  ;;  %v122_v45 = vadd.f32 %v121_v41, %v120_v36  ;;  %v750_v36 = vor.u32 %v868_v33, %v747_v34  ;;  %v739_v41 = vld [vmem:[#allocation7 + $0x94] sm:$0xf0]  ;;  %428 = vmatpush.bf16.msrb.mxu0 %v786_v32  ;;  %v818_v33 = vld [vmem:[#allocation7 + $0x19c] sm:$0xf] }
  0xa7   :  { %v886_v34 = vld [vmem:[#allocation7 + $0x1b4] sm:$0xf0]  ;;  %v826_v32 = vld [vmem:[#allocation7 + $0x50] sm:$0xf] }
  0xa8   :  { %v130_v46 = vadd.f32 %v129_v44, %v128_v42  ;;  %v123_v47 = vmul.f32 0.125, %v122_v45  ;;  %v738_v44 = vor.u32 %v867_v38, %v737_v37  ;;  %385 = vmatpush.bf16.msra.mxu3 %v750_v36  ;;  %v819_v36 = vor.u32 %v886_v34, %v818_v33  ;;  %v885_v37 = vld [vmem:[#allocation7 + $0x17c] sm:$0xf0]  ;;  %v888_v33 = vld [vmem:[#allocation7 + $0x68] sm:$0xf0] }
  0xa9   :  { %v827_v34 = vor.u32 %v888_v33, %v826_v32 }
  0xaa   :  { %v131_v48 = vmul.f32 0.125, %v130_v46  ;;  %v132_v49 = vmul.f32 %v123_v47, %v123_v47  ;;  %502 = vmatpush.bf16.msra.mxu0 %v819_v36  ;;  %v887_v36 = vld [vmem:[#allocation7 + $0x30] sm:$0xf0] }
  0xac   :  { %v133_v50 = vsub.f32 %v131_v48, %v132_v49  ;;  %v729_v48 = vld [vmem:[#allocation7 + $0x40] sm:$0xf]  ;;  %v865_v49 = vld [vmem:[#allocation7 + $0x58] sm:$0xf0] }
  0xae   :  { %v134_v51 = vmax.f32 %v133_v50, 0.0  ;;  %v864_v50 = vld [vmem:[#allocation7 + $0x44] sm:$0xf] }
  0xb0   :  { %v135_v52 = vadd.f32 1e-05, %v134_v51  ;;  %v731_v51 = vld [vmem:[#allocation7 + $0x5c] sm:$0xf0] }
  0xb2   :  { %908 = vrsqrt.f32 %v135_v52  ;;  %vm142_vm2 = vweird.f32 %v135_v52 }
  0xb8   :  { %v909_v53 = vpop.eup %908 }
  0xb9   :  { %v137_v54 = vmul.f32 %v909_v53, %v135_v52  ;;  %vm143_vm1 = vweird.f32 %v909_v53 }
  0xba   :  { %vm144_vm3 = vmor %vm142_vm2, %vm143_vm1 }
  0xbb   :  { %v138_v55 = vmul.f32 %v909_v53, %v137_v54  ;;  %v730_v54 = vor.u32 %v865_v49, %v729_v48  ;;  %v802_v49 = vld [vmem:[#allocation7 + $0xbc] sm:$0xf] }
  0xbd   :  { %v139_v56 = vmul.f32 0.5, %v138_v55 }
  0xbf   :  { %v140_v57 = vsub.f32 1.5, %v139_v56 }
  0xc1   :  { %v141_v59 = vmul.f32 %v909_v53, %v140_v57  ;;  %v734_v57 = vor.u32 %v864_v50, %v731_v51  ;;  %v882_v50 = vld [vmem:[#allocation7 + $0xd4] sm:$0xf0] }
  0xc3   :  { %v145_v60 = vsel %vm144_vm3, %v909_v53, %v141_v59  ;;  %v863_v59 = vld [vmem:[#allocation7 + $0x20] sm:$0xf0] }
  0xc4   :  { %v146_v61 = vmul.f32 %v145_v60, %v115_v58  ;;  %v721_v58 = vld [vmem:[#allocation7 + $0x8] sm:$0xf] }
  0xc6   :  { %v147_v63 = vperm.slane %v146_v61, 0  ;;  %v149_v0 = vmul.f32 %v146_v61, %v123_v47  ;;  %v742_v47 = vor.u32 %v866_v40, %v739_v41  ;;  %v862_v61 = vld [vmem:[#allocation7 + $0xc] sm:$0xf]  ;;  %v884_v41 = vld [vmem:[#allocation7 + $0x144] sm:$0xf0] }
  0xc7   :  { %v810_v40 = vld [vmem:[#allocation7 + $0x12c] sm:$0xf] }
  0xc8   :  { %v150_v1 = vsub.f32 %v116_v62, %v149_v0  ;;  %v148_v2 = vmul.f32 %v147_v63, %v111_v25  ;;  %v753_v25 = vld [vmem:[#allocation7 + $0xe8] sm:$0xf]  ;;  %386 = vmatpush.bf16.msra.mxu3 %v742_v47 }
  0xc9   :  { %v754_v29 = vor.u32 %v871_v26, %v753_v25  ;;  %v723_v62 = vld [vmem:[#allocation7 + $0x24] sm:$0xf0] }
  0xca   :  { %v151_v3 = vperm.slane %v150_v1, 0  ;;  %v722_v1 = vor.u32 %v863_v59, %v721_v58 }
  0xcb   :  { %371 = vmatpush.bf16.msra.mxu2 %v754_v29 }
  0xcc   :  { %v152_v4 = vadd.f32 %v151_v3, %v148_v2  ;;  %387 = vmatpush.bf16.msra.mxu3 %v734_v57  ;;  %v726_v3 = vor.u32 %v862_v61, %v723_v62  ;;  %v403_v61 = vld [vmem:[#allocation5] sm:$0xff] }
  0xce   :  { %v153_v5 = vmax.f32 %v152_v4, 0.0 }
  0xcf   :  { %372 = vmatpush.bf16.msra.mxu2 %v746_v35  ;;  %v814_v35 = vld [vmem:[#allocation7 + $0x164] sm:$0xf] }
  0xd0   :  { %v154_v6 = vpack.c.bf16 %v153_v5, %v153_v5  ;;  %388 = vmatpush.bf16.msra.mxu3 %v726_v3  ;;  %v815_v38 = vor.u32 %v885_v37, %v814_v35  ;;  %v880_v3 = vld [vmem:[#allocation7 + $0x64] sm:$0xf0]  ;;  %v822_v35 = vld [vmem:[#allocation7 + $0x18] sm:$0xf] }
  0xd1   :  { %v823_v37 = vor.u32 %v887_v36, %v822_v35 }
  0xd2   :  { %227 = vmatmul.bf16.vlgmr.msra.gmra.mxu1 %v154_v6  ;;  %503 = vmatpush.bf16.msra.mxu0 %v815_v38  ;;  %v907_v38 = vld [vmem:[#allocation8 + $0x7] ss:$0 sm:$0xff] }
  0xd3   :  { %373 = vmatpush.bf16.msra.mxu2 %v738_v44  ;;  %v904_v44 = vld [vmem:[#allocation8 + $0x4] ss:$0 sm:$0xff] }
  0xd7   :  { %374 = vmatpush.bf16.msra.mxu2 %v730_v54  ;;  %v803_v54 = vor.u32 %v882_v50, %v802_v49 }
  0xdb   :  { %375 = vmatpush.bf16.msra.mxu2 %v722_v1 }
 0x14f   :  { %v228_v39 = vpop.f32.mrf.mxu1 }
 0x150   :  { %v234_v42 = vrot.slane %v228_v39, 4  ;;  %v241_v43 = vmul.f32 %v228_v39, %v228_v39 }
 0x152   :  { %v235_v45 = vadd.f32 %v234_v42, %v228_v39  ;;  %v242_v46 = vrot.slane %v241_v43, 4  ;;  %v806_v42 = vld [vmem:[#allocation7 + $0xf4] sm:$0xf] }
 0x154   :  { %v236_v52 = vrot.slane %v235_v45, 2  ;;  %v243_v53 = vadd.f32 %v242_v46, %v241_v43  ;;  %v883_v43 = vld [vmem:[#allocation7 + $0x10c] sm:$0xf0] }
 0x155   :  { %v807_v46 = vor.u32 %v883_v43, %v806_v42 }
 0x156   :  { %v237_v55 = vadd.f32 %v236_v52, %v235_v45  ;;  %v244_v56 = vrot.slane %v243_v53, 2  ;;  %v905_v45 = vld [vmem:[#allocation8 + $0x5] ss:$0 sm:$0xff] }
 0x157   :  { %v230_v60 = vpop.f32.mrf.mxu1 }
 0x158   :  { %v238_v63 = vrot.slane %v237_v55, 1  ;;  %v245_v0 = vadd.f32 %v244_v56, %v243_v53  ;;  %v881_v56 = vld [vmem:[#allocation7 + $0x9c] sm:$0xf0] }
 0x15a   :  { %v246_v2 = vrot.slane %v245_v0, 1  ;;  %v239_v4 = vadd.f32 %v238_v63, %v237_v55  ;;  %v798_v55 = vld [vmem:[#allocation7 + $0x84] sm:$0xf] }
 0x15b   :  { %v799_v58 = vor.u32 %v881_v56, %v798_v55 }
 0x15c   :  { %v247_v5 = vadd.f32 %v246_v2, %v245_v0  ;;  %v240_v6 = vmul.f32 0.125, %v239_v4  ;;  %v794_v2 = vld [vmem:[#allocation7 + $0x4c] sm:$0xf] }
 0x15d   :  { %v795_v4 = vor.u32 %v880_v3, %v794_v2 }
 0x15e   :  { %v248_v7 = vmul.f32 0.125, %v247_v5  ;;  %v249_v8 = vmul.f32 %v240_v6, %v240_v6  ;;  %v790_v5 = vld [vmem:[#allocation7 + $0x14] sm:$0xf] }
 0x160   :  { %v250_v9 = vsub.f32 %v248_v7, %v249_v8  ;;  %v850_v8 = vld [vmem:[#allocation7 + $0x1a0] sm:$0xf] }
 0x162   :  { %v251_v10 = vmax.f32 %v250_v9, 0.0  ;;  %v894_v9 = vld [vmem:[#allocation7 + $0x1b8] sm:$0xf0] }
 0x164   :  { %v252_v11 = vadd.f32 1e-05, %v251_v10  ;;  %v846_v10 = vld [vmem:[#allocation7 + $0x168] sm:$0xf] }
 0x166   :  { %910 = vrsqrt.f32 %v252_v11  ;;  %vm259_vm5 = vweird.f32 %v252_v11 }
 0x16c   :  { %v911_v12 = vpop.eup %910 }
 0x16d   :  { %v254_v13 = vmul.f32 %v911_v12, %v252_v11  ;;  %vm260_vm4 = vweird.f32 %v911_v12  ;;  %v851_v11 = vor.u32 %v894_v9, %v850_v8 }
 0x16e   :  { %vm261_vm6 = vmor %vm259_vm5, %vm260_vm4 }
 0x16f   :  { %v255_v14 = vmul.f32 %v911_v12, %v254_v13  ;;  %581 = vmatpush.bf16.msrb.mxu1 %v851_v11 }
 0x171   :  { %v256_v15 = vmul.f32 0.5, %v255_v14  ;;  %v842_v14 = vld [vmem:[#allocation7 + $0x130] sm:$0xf] }
 0x173   :  { %v257_v16 = vsub.f32 1.5, %v256_v15  ;;  %v892_v15 = vld [vmem:[#allocation7 + $0x148] sm:$0xf0] }
 0x175   :  { %v258_v18 = vmul.f32 %v911_v12, %v257_v16  ;;  %v843_v16 = vor.u32 %v892_v15, %v842_v14 }
 0x177   :  { %v262_v19 = vsel %vm261_vm6, %v911_v12, %v258_v18  ;;  %v893_v12 = vld [vmem:[#allocation7 + $0x180] sm:$0xf0]  ;;  %v891_v18 = vld [vmem:[#allocation7 + $0x110] sm:$0xf0] }
 0x178   :  { %v263_v20 = vmul.f32 %v262_v19, %v232_v17  ;;  %v847_v13 = vor.u32 %v893_v12, %v846_v10  ;;  %v838_v17 = vld [vmem:[#allocation7 + $0xf8] sm:$0xf] }
 0x179   :  { %v839_v19 = vor.u32 %v891_v18, %v838_v17 }
 0x17a   :  { %v264_v22 = vperm.slane %v263_v20, 0  ;;  %v266_v23 = vmul.f32 %v263_v20, %v240_v6  ;;  %v879_v6 = vld [vmem:[#allocation7 + $0x2c] sm:$0xf0]  ;;  %582 = vmatpush.bf16.msrb.mxu1 %v847_v13  ;;  %v834_v20 = vld [vmem:[#allocation7 + $0xc0] sm:$0xf] }
 0x17b   :  { %v791_v7 = vor.u32 %v879_v6, %v790_v5 }
 0x17c   :  { %v267_v24 = vsub.f32 %v233_v21, %v266_v23  ;;  %v265_v25 = vmul.f32 %v264_v22, %v228_v39  ;;  %v811_v39 = vor.u32 %v884_v41, %v810_v40  ;;  %v890_v21 = vld [vmem:[#allocation7 + $0xd8] sm:$0xf0]  ;;  %v830_v23 = vld [vmem:[#allocation7 + $0x88] sm:$0xf] }
 0x17d   :  { %v835_v22 = vor.u32 %v890_v21, %v834_v20 }
 0x17e   :  { %v268_v26 = vperm.slane %v267_v24, 0  ;;  %504 = vmatpush.bf16.msra.mxu0 %v811_v39  ;;  %583 = vmatpush.bf16.msrb.mxu1 %v843_v16  ;;  %v889_v24 = vld [vmem:[#allocation7 + $0xa0] sm:$0xf0] }
 0x180   :  { %v269_v27 = vadd.f32 %v268_v26, %v265_v25  ;;  %v831_v25 = vor.u32 %v889_v24, %v830_v23  ;;  %v906_v26 = vld [vmem:[#allocation8 + $0x6] ss:$0 sm:$0xff] }
 0x182   :  { %v270_v28 = vmax.f32 %v269_v27, 0.0  ;;  %505 = vmatpush.bf16.msra.mxu0 %v807_v46  ;;  %584 = vmatpush.bf16.msrb.mxu1 %v839_v19 }
 0x184   :  { %v271_v29 = vpack.c.bf16 %v270_v28, %v270_v28 }
 0x186   :  { %376 = vmatmul.bf16.vlgmr.msra.gmra.mxu2 %v271_v29  ;;  %389 = vmatmul.bf16.vlgmr.msra.gmra.mxu3 %v271_v29 }
 0x187   :  { %506 = vmatpush.bf16.msra.mxu0 %v803_v54  ;;  %585 = vmatpush.bf16.msrb.mxu1 %v835_v22 }
 0x18b   :  { %507 = vmatpush.bf16.msra.mxu0 %v799_v58  ;;  %586 = vmatpush.bf16.msrb.mxu1 %v831_v25 }
 0x18f   :  { %508 = vmatpush.bf16.msra.mxu0 %v795_v4  ;;  %587 = vmatpush.bf16.msrb.mxu1 %v827_v34 }
 0x193   :  { %509 = vmatpush.bf16.msra.mxu0 %v791_v7  ;;  %588 = vmatpush.bf16.msrb.mxu1 %v823_v37 }
 0x209   :  { %v377_v47 = vpop.f32.mrf.mxu2  ;;  %v390_v48 = vpop.f32.mrf.mxu3 }
 0x20a   :  { %v396_v51 = vadd.f32 %v904_v44, %v377_v47  ;;  %v399_v52 = vadd.f32 %v905_v45, %v390_v48 }
 0x20c   :  { %v400_v53 = vmul.f32 0.5, %v399_v52  ;;  %626 = vst.msk [vmem:[#allocation11] sm:$0xff] %vm417_vm7, %v396_v51 }
 0x20d   :  { %627 = vst.msk [vmem:[#allocation13] sm:$0xff] %vm417_vm7, %v399_v52  ;;  %649 = dma.vmem_to_hbm [thread:$0]  %s645_s3, 128, %s647_s19, [#allocation12]  }
 0x20e   :  { %v401_v57 = vmul.f32 1.442695, %v400_v53  ;;  %660 = dma.vmem_to_hbm [thread:$0]  %s656_s21, 128, %s658_s24, [#allocation12]  }
 0x210   :  { %912 = vpow2.f32 %v401_v57 }
 0x211   :  { %v379_v59 = vpop.f32.mrf.mxu2  ;;  %v392_v60 = vpop.f32.mrf.mxu3 }
 0x216   :  { %v913_v62 = vpop.eup %912 }
 0x217   :  { %v404_v63 = vmul.f32 %v913_v62, %v403_v61 }
 0x219   :  { %v405_v0 = vadd.f32 %v404_v63, %v396_v51 }
 0x21b   :  { %v406_v1 = vpack.c.bf16 %v405_v0, %v405_v0 }
 0x21d   :  { %787 = vmatmul.msk.bf16.vlgmr.msrb.gmra.mxu0 %vm417_vm7, %v406_v1 }
 0x29a   :  { %v430_v27 = vpop.f32.mrf.mxu0 }
 0x29b   :  { %v431_v28 = vadd.f32 %v906_v26, %v430_v27 }
 0x29d   :  { %v434_v29 = vmax.f32 %v431_v28, 0.0 }
 0x29f   :  { %v435_v30 = vpack.c.bf16 %v434_v29, %v434_v29 }
 0x2a1   :  { %510 = vmatmul.bf16.vlgmr.msra.gmra.mxu0 %v435_v30 }
 0x2a2   :  { %v432_v31 = vpop.f32.mrf.mxu0 }
 0x31e   :  { %v511_v40 = vpop.f32.mrf.mxu0 }
 0x31f   :  { %v512_v41 = vadd.f32 %v907_v38, %v511_v40 }
 0x321   :  { %v515_v39 = vmax.f32 %v512_v41, 0.0 }
 0x323   :  { %v516_v42 = vpack.c.bf16 %v515_v39, %v515_v39 }
 0x325   :  { %589 = vmatmul.bf16.vlgmr.msrb.gmra.mxu1 %v516_v42 }
 0x326   :  { %v513_v43 = vpop.f32.mrf.mxu0 }
 0x3a2   :  { %v590_v44 = vpop.f32.mrf.mxu1 }
 0x3a3   :  { %v594_v45 = vrot.slane %v590_v44, 4  ;;  %v601_v46 = vmul.f32 %v590_v44, %v590_v44 }
 0x3a5   :  { %v595_v47 = vadd.f32 %v594_v45, %v590_v44  ;;  %v602_v48 = vrot.slane %v601_v46, 4 }
 0x3a7   :  { %v596_v49 = vrot.slane %v595_v47, 2  ;;  %v603_v50 = vadd.f32 %v602_v48, %v601_v46 }
 0x3a9   :  { %v597_v51 = vadd.f32 %v596_v49, %v595_v47  ;;  %v604_v52 = vrot.slane %v603_v50, 2 }
 0x3aa   :  { %v592_v53 = vpop.f32.mrf.mxu1 }
 0x3ab   :  { %v598_v54 = vrot.slane %v597_v51, 1  ;;  %v605_v55 = vadd.f32 %v604_v52, %v603_v50 }
 0x3ad   :  { %v599_v56 = vadd.f32 %v598_v54, %v597_v51  ;;  %v606_v57 = vrot.slane %v605_v55, 1 }
 0x3af   :  { %v600_v58 = vmul.f32 0.125, %v599_v56  ;;  %v607_v59 = vadd.f32 %v606_v57, %v605_v55 }
 0x3b1   :  { %v608_v60 = vmul.f32 0.125, %v607_v59  ;;  %v609_v61 = vmul.f32 %v600_v58, %v600_v58  ;;  %v612_v7 = vsub.f32 %v590_v44, %v600_v58 }
 0x3b3   :  { %v610_v62 = vsub.f32 %v608_v60, %v609_v61 }
 0x3b5   :  { %v611_v63 = vmax.f32 %v610_v62, 0.0 }
 0x3b7   :  { %v613_v0 = vadd.f32 1e-05, %v611_v63 }
 0x3b9   :  { %914 = vrsqrt.f32 %v613_v0  ;;  %vm620_vm9 = vweird.f32 %v613_v0 }
 0x3bf   :  { %v915_v1 = vpop.eup %914 }
 0x3c0   :  { %v615_v2 = vmul.f32 %v915_v1, %v613_v0  ;;  %vm621_vm8 = vweird.f32 %v915_v1 }
 0x3c1   :  { %vm622_vm10 = vmor %vm620_vm9, %vm621_vm8 }
 0x3c2   :  { %v616_v3 = vmul.f32 %v915_v1, %v615_v2 }
 0x3c4   :  { %v617_v4 = vmul.f32 0.5, %v616_v3 }
 0x3c6   :  { %v618_v5 = vsub.f32 1.5, %v617_v4 }
 0x3c8   :  { %v619_v6 = vmul.f32 %v915_v1, %v618_v5 }
 0x3ca   :  { %v623_v8 = vsel %vm622_vm10, %v915_v1, %v619_v6 }
 0x3cb   :  { %v624_v9 = vmul.f32 %v623_v8, %v612_v7 }
 0x3cd   :  { %625 = vst.msk [vmem:[#allocation10] sm:$0xff] %vm98_vm0, %v624_v9 }
 0x3ce   :  { %638 = dma.vmem_to_hbm [thread:$0]  %s634_s6, 128, %s636_s27, [#allocation4]  }
 0x3cf   :  { %1090 = dma.done.wait [#allocation4], 128  }
 0x3d0   :  { %1091 = vsyncadd [#allocation4], 4294967168 }
 0x3d1   :  { %1092 = dma.done.wait [#allocation12], 256  }
 0x3d2   :  { %1093 = vsyncadd [#allocation12], 4294967040 }
 0x3d3   :  { %673 = vsyncpa [#allocation3], 1 }
 0x3d4   :  { %674 = vsyncpa [#allocation6], 1 }
 0x3d5   :  { %675 = vsyncpa [#allocation9], 1 }
 0x3d6   :  { %676 = vsyncpa [#allocation4], 1 }
 0x3d7   :  { %677 = vsyncpa [#allocation12], 1 }

</bundles_post_ra>
